<compile_context>
chip_gen: v7x
topology: tpu7x:2x2x1
jax: 0.10.0
libtpu: 0.0.40
codegen_flags: <defaults>
</compile_context>

<pallas_src>
import functools

import jax
import jax.numpy as jnp
from jax.experimental import pallas as pl
from jax.experimental.pallas import tpu as pltpu

_LANES = 128


def _round_up(x: int, m: int) -> int:
    return ((x + m - 1) // m) * m


def _aiw_loss_kernel(upp_ref, low_ref, tgt_ref, out_ref,
                     sum_ref, max_ref, min_ref, *, inv_n):
    pid = pl.program_id(0)

    # Init running accumulators on the first grid step.
    @pl.when(pid == 0)
    def _():
        sum_ref[...] = jnp.zeros_like(sum_ref)
        max_ref[...] = jnp.full(max_ref.shape, -jnp.inf, dtype=max_ref.dtype)
        min_ref[...] = jnp.full(min_ref.shape, jnp.inf, dtype=min_ref.dtype)

    # Load native-dtype tiles, upcast in VMEM (v5e has no bf16 VPU anyway).
    upp = upp_ref[...].astype(jnp.float32)
    low = low_ref[...].astype(jnp.float32)
    tgt = tgt_ref[...].astype(jnp.float32)

    width = jnp.abs(upp - low)

    sum_ref[...] = sum_ref[...] + jnp.sum(width, axis=(0, 1), keepdims=True)
    max_ref[...] = jnp.maximum(max_ref[...],
                               jnp.max(tgt, axis=(0, 1), keepdims=True))
    min_ref[...] = jnp.minimum(min_ref[...],
                               jnp.min(tgt, axis=(0, 1), keepdims=True))

    # Finalize: mean over true N, divide by target range, store scalar.
    @pl.when(pid == pl.num_programs(0) - 1)
    def _():
        width_mean = sum_ref[...] * jnp.float32(inv_n)
        denom = max_ref[...] - min_ref[...]
        out_ref[...] = (width_mean / denom).astype(out_ref.dtype)


def _pad_to_slab(col: jax.Array, fill, padded_rows: int) -> jax.Array:
    """Pad a 1-D column to padded_rows*128 elems and reshape lane-dense."""
    n = col.shape[0]
    pad = padded_rows * _LANES - n
    if pad > 0:
        tail = jnp.full((pad,), fill, dtype=col.dtype)
        col = jnp.concatenate([col, tail])
    return col.reshape(padded_rows, _LANES)


def aiw_loss(preds: jax.Array, target: jax.Array, *, tile_rows: int = 1024) -> jax.Array:
    """Pallas implementation of AIW_loss.forward. Returns a scalar (f32)."""
    assert preds.shape[0] == target.shape[0]
    assert preds.shape[1] >= 2
    n = preds.shape[0]

    rows = -(-n // _LANES)                               # cdiv(N, 128)
    tile_rows = _round_up(max(8, min(tile_rows, _round_up(rows, 8))), 8)
    padded_rows = _round_up(rows, tile_rows)
    num_tiles = padded_rows // tile_rows

    # Only the three needed columns are ever moved by the kernel; native dtype.
    upp = preds[:, 0]
    low = preds[:, 1]
    tgt = target[:, 0]

    upp_slab = _pad_to_slab(upp, 0, padded_rows)          # pad width with 0
    low_slab = _pad_to_slab(low, 0, padded_rows)
    tgt_slab = _pad_to_slab(tgt, tgt[0], padded_rows)     # pad keeps max/min

    kernel = functools.partial(_aiw_loss_kernel, inv_n=1.0 / n)

    in_spec = pl.BlockSpec((tile_rows, _LANES), lambda i: (i, 0))
    out = pl.pallas_call(
        kernel,
        out_shape=jax.ShapeDtypeStruct((1, 1), jnp.float32),
        grid_spec=pltpu.PrefetchScalarGridSpec(
            num_scalar_prefetch=0,
            grid=(num_tiles,),
            in_specs=[in_spec, in_spec, in_spec],
            out_specs=pl.BlockSpec((1, 1), lambda i: (0, 0)),
            scratch_shapes=[pltpu.VMEM((1, 1), jnp.float32)] * 3,
        ),
        compiler_params=pltpu.CompilerParams(
            dimension_semantics=("arbitrary",)),
    )(upp_slab, low_slab, tgt_slab)
    return out[0, 0]


if __name__ == "__main__":
    key = jax.random.PRNGKey(0)
    k1, k2 = jax.random.split(key)

    # Small shapes consistent with the module: preds (N, 2), target (N, 1).
    N = 8
    preds = jax.random.normal(k1, (N, 2), dtype=jnp.float32)
    target = jax.random.normal(k2, (N, 1), dtype=jnp.float32)

    loss = aiw_loss(preds, target)
    jax.block_until_ready(loss)

    ref = jnp.abs(preds[:, 0] - preds[:, 1]).mean() / (
        target[:, 0].max() - target[:, 0].min())
    assert jnp.allclose(loss, ref, rtol=1e-5, atol=1e-6), (loss, ref)

    # Exercise the multi-tile grid path (accumulate across steps + tail pad).
    N2 = 3000
    preds2 = jax.random.normal(k1, (N2, 2), dtype=jnp.float32)
    target2 = jax.random.normal(k2, (N2, 1), dtype=jnp.float32)
    loss2 = aiw_loss(preds2, target2, tile_rows=8)
    jax.block_until_ready(loss2)
    ref2 = jnp.abs(preds2[:, 0] - preds2[:, 1]).mean() / (
        target2[:, 0].max() - target2[:, 0].min())
    assert jnp.allclose(loss2, ref2, rtol=1e-5, atol=1e-6), (loss2, ref2)

    print("KERNEL_OK")
</pallas_src>

<mosaic_0001>
module attributes {stable_mosaic.version = 11 : i64} {
  func.func @_aiw_loss_kernel(%arg0: i32, %arg1: memref<8x128xf32, #tpu.memory_space<vmem>>, %arg2: memref<8x128xf32, #tpu.memory_space<vmem>>, %arg3: memref<8x128xf32, #tpu.memory_space<vmem>>, %arg4: memref<1x1xf32, #tpu.memory_space<vmem>>, %arg5: memref<1x1xf32, #tpu.memory_space<vmem>>, %arg6: memref<1x1xf32, #tpu.memory_space<vmem>>, %arg7: memref<1x1xf32, #tpu.memory_space<vmem>>) attributes {dimension_semantics = [#tpu.dimension_semantics<arbitrary>], iteration_bounds = array<i64: 1>, scalar_prefetch = 0 : i64, scratch_operands = 3 : i64, tpu.core_type = #tpu.core_type<tc>, window_params = [{transform_indices = @transform_0, window_bounds = array<i64: 8, 128>}, {transform_indices = @transform_1, window_bounds = array<i64: 8, 128>}, {transform_indices = @transform_2, window_bounds = array<i64: 8, 128>}, {pipeline_mode = #tpu.pipeline_mode<synchronous>, transform_indices = @transform_3, window_bounds = array<i64: 1, 1>}]} {
    %c0_i32 = arith.constant 0 : i32
    %0 = arith.cmpi eq, %arg0, %c0_i32 : i32
    %1 = arith.extui %0 : i1 to i32
    %c0_i32_0 = arith.constant 0 : i32
    %2 = arith.cmpi ne, %1, %c0_i32_0 : i32
    scf.if %2 {
      %cst_22 = arith.constant 0.000000e+00 : f32
      %35 = vector.broadcast %cst_22 : f32 to vector<1x1xf32>
      %c0_23 = arith.constant 0 : index
      %c0_24 = arith.constant 0 : index
      %36 = vector.load %arg5[%c0_23, %c0_24] : memref<1x1xf32, #tpu.memory_space<vmem>>, vector<1x1xf32>
      tpu.vector_store %arg5[%c0_23, %c0_24], %35 {strides = array<i32>} : memref<1x1xf32, #tpu.memory_space<vmem>>, vector<1x1xf32>,
      %cst_25 = arith.constant 0xFF800000 : f32
      %37 = vector.broadcast %cst_25 : f32 to vector<1x1xf32>
      %c0_26 = arith.constant 0 : index
      %c0_27 = arith.constant 0 : index
      %38 = vector.load %arg6[%c0_26, %c0_27] : memref<1x1xf32, #tpu.memory_space<vmem>>, vector<1x1xf32>
      tpu.vector_store %arg6[%c0_26, %c0_27], %37 {strides = array<i32>} : memref<1x1xf32, #tpu.memory_space<vmem>>, vector<1x1xf32>,
      %cst_28 = arith.constant 0x7F800000 : f32
      %39 = vector.broadcast %cst_28 : f32 to vector<1x1xf32>
      %c0_29 = arith.constant 0 : index
      %c0_30 = arith.constant 0 : index
      %40 = vector.load %arg7[%c0_29, %c0_30] : memref<1x1xf32, #tpu.memory_space<vmem>>, vector<1x1xf32>
      tpu.vector_store %arg7[%c0_29, %c0_30], %39 {strides = array<i32>} : memref<1x1xf32, #tpu.memory_space<vmem>>, vector<1x1xf32>,
    } else {
    }
    %c0 = arith.constant 0 : index
    %c0_1 = arith.constant 0 : index
    %3 = vector.load %arg1[%c0, %c0_1] : memref<8x128xf32, #tpu.memory_space<vmem>>, vector<8x128xf32>
    %c0_2 = arith.constant 0 : index
    %c0_3 = arith.constant 0 : index
    %4 = vector.load %arg2[%c0_2, %c0_3] : memref<8x128xf32, #tpu.memory_space<vmem>>, vector<8x128xf32>
    %c0_4 = arith.constant 0 : index
    %c0_5 = arith.constant 0 : index
    %5 = vector.load %arg3[%c0_4, %c0_5] : memref<8x128xf32, #tpu.memory_space<vmem>>, vector<8x128xf32>
    %6 = arith.subf %3, %4 : vector<8x128xf32>
    %7 = math.absf %6 : vector<8x128xf32>
    %c0_6 = arith.constant 0 : index
    %c0_7 = arith.constant 0 : index
    %8 = vector.load %arg5[%c0_6, %c0_7] : memref<1x1xf32, #tpu.memory_space<vmem>>, vector<1x1xf32>
    %9 = vector.shape_cast %7 : vector<8x128xf32> to vector<1x8x128xf32>
    %cst = arith.constant dense<0.000000e+00> : vector<1xf32>
    %10 = vector.multi_reduction <add>, %9, %cst [1, 2] : vector<1x8x128xf32> to vector<1xf32>
    %11 = vector.shape_cast %10 : vector<1xf32> to vector<1x1x1xf32>
    %12 = vector.extract %11[0, 0, 0] : f32 from vector<1x1x1xf32>
    %13 = vector.broadcast %12 : f32 to vector<1x1xf32>
    %14 = arith.addf %8, %13 : vector<1x1xf32>
    %c0_8 = arith.constant 0 : index
    %c0_9 = arith.constant 0 : index
    %15 = vector.load %arg5[%c0_8, %c0_9] : memref<1x1xf32, #tpu.memory_space<vmem>>, vector<1x1xf32>
    tpu.vector_store %arg5[%c0_8, %c0_9], %14 {strides = array<i32>} : memref<1x1xf32, #tpu.memory_space<vmem>>, vector<1x1xf32>,
    %c0_10 = arith.constant 0 : index
    %c0_11 = arith.constant 0 : index
    %16 = vector.load %arg6[%c0_10, %c0_11] : memref<1x1xf32, #tpu.memory_space<vmem>>, vector<1x1xf32>
    %17 = vector.shape_cast %5 : vector<8x128xf32> to vector<1x8x128xf32>
    %cst_12 = arith.constant dense<0xFF800000> : vector<1xf32>
    %18 = vector.multi_reduction <maximumf>, %17, %cst_12 [1, 2] : vector<1x8x128xf32> to vector<1xf32>
    %19 = vector.shape_cast %18 : vector<1xf32> to vector<1x1x1xf32>
    %20 = vector.extract %19[0, 0, 0] : f32 from vector<1x1x1xf32>
    %21 = vector.broadcast %20 : f32 to vector<1x1xf32>
    %22 = arith.maximumf %16, %21 : vector<1x1xf32>
    %c0_13 = arith.constant 0 : index
    %c0_14 = arith.constant 0 : index
    %23 = vector.load %arg6[%c0_13, %c0_14] : memref<1x1xf32, #tpu.memory_space<vmem>>, vector<1x1xf32>
    tpu.vector_store %arg6[%c0_13, %c0_14], %22 {strides = array<i32>} : memref<1x1xf32, #tpu.memory_space<vmem>>, vector<1x1xf32>,
    %c0_15 = arith.constant 0 : index
    %c0_16 = arith.constant 0 : index
    %24 = vector.load %arg7[%c0_15, %c0_16] : memref<1x1xf32, #tpu.memory_space<vmem>>, vector<1x1xf32>
    %25 = vector.shape_cast %5 : vector<8x128xf32> to vector<1x8x128xf32>
    %cst_17 = arith.constant dense<0x7F800000> : vector<1xf32>
    %26 = vector.multi_reduction <minimumf>, %25, %cst_17 [1, 2] : vector<1x8x128xf32> to vector<1xf32>
    %27 = vector.shape_cast %26 : vector<1xf32> to vector<1x1x1xf32>
    %28 = vector.extract %27[0, 0, 0] : f32 from vector<1x1x1xf32>
    %29 = vector.broadcast %28 : f32 to vector<1x1xf32>
    %30 = arith.minimumf %24, %29 : vector<1x1xf32>
    %c0_18 = arith.constant 0 : index
    %c0_19 = arith.constant 0 : index
    %31 = vector.load %arg7[%c0_18, %c0_19] : memref<1x1xf32, #tpu.memory_space<vmem>>, vector<1x1xf32>
    tpu.vector_store %arg7[%c0_18, %c0_19], %30 {strides = array<i32>} : memref<1x1xf32, #tpu.memory_space<vmem>>, vector<1x1xf32>,
    %c0_i32_20 = arith.constant 0 : i32
    %32 = arith.cmpi eq, %arg0, %c0_i32_20 : i32
    %33 = arith.extui %32 : i1 to i32
    %c0_i32_21 = arith.constant 0 : i32
    %34 = arith.cmpi ne, %33, %c0_i32_21 : i32
    scf.if %34 {
      %c0_22 = arith.constant 0 : index
      %c0_23 = arith.constant 0 : index
      %35 = vector.load %arg5[%c0_22, %c0_23] : memref<1x1xf32, #tpu.memory_space<vmem>>, vector<1x1xf32>
      %cst_24 = arith.constant 1.250000e-01 : f32
      %36 = vector.broadcast %cst_24 : f32 to vector<1x1xf32>
      %37 = arith.mulf %35, %36 : vector<1x1xf32>
      %c0_25 = arith.constant 0 : index
      %c0_26 = arith.constant 0 : index
      %38 = vector.load %arg6[%c0_25, %c0_26] : memref<1x1xf32, #tpu.memory_space<vmem>>, vector<1x1xf32>
      %c0_27 = arith.constant 0 : index
      %c0_28 = arith.constant 0 : index
      %39 = vector.load %arg7[%c0_27, %c0_28] : memref<1x1xf32, #tpu.memory_space<vmem>>, vector<1x1xf32>
      %40 = arith.subf %38, %39 : vector<1x1xf32>
      %41 = arith.divf %37, %40 : vector<1x1xf32>
      %c0_29 = arith.constant 0 : index
      %c0_30 = arith.constant 0 : index
      %42 = vector.load %arg4[%c0_29, %c0_30] : memref<1x1xf32, #tpu.memory_space<vmem>>, vector<1x1xf32>
      tpu.vector_store %arg4[%c0_29, %c0_30], %41 {strides = array<i32>} : memref<1x1xf32, #tpu.memory_space<vmem>>, vector<1x1xf32>,
    } else {
    }
    return
  }
  func.func @transform_0(%arg0: i32) -> (i32, i32) {
    %c0_i32 = arith.constant 0 : i32
    %c0_i32_0 = arith.constant 0 : i32
    return %arg0, %c0_i32 : i32, i32
  }
  func.func @transform_1(%arg0: i32) -> (i32, i32) {
    %c0_i32 = arith.constant 0 : i32
    %c0_i32_0 = arith.constant 0 : i32
    return %arg0, %c0_i32 : i32, i32
  }
  func.func @transform_2(%arg0: i32) -> (i32, i32) {
    %c0_i32 = arith.constant 0 : i32
    %c0_i32_0 = arith.constant 0 : i32
    return %arg0, %c0_i32 : i32, i32
  }
  func.func @transform_3(%arg0: i32) -> (i32, i32) {
    %c0_i32 = arith.constant 0 : i32
    %c0_i32_0 = arith.constant 0 : i32
    %c0_i32_1 = arith.constant 0 : i32
    return %c0_i32, %c0_i32_0 : i32, i32
  }
}

</mosaic_0001>

<bundles_post_ra>
// kernel: tpu_custom_call.1
= control target key start
LH: loop header
LB: loop body
LE: loop exit
PB: predicated region body
PF: predicated region fallthrough
CT: control target
= control target key end

     0   :  { %8 = vsyncpa [#allocation6], 0  ;;  %s321_s0 = inlined_call_operand.hbm [shape: f32[8,128], index: 0, kind: input, shape index: {}]   ;;  %s322_s1 = inlined_call_operand.hbm [shape: f32[8,128], index: 1, kind: input, shape index: {}]   ;;  %s323_s2 = inlined_call_operand.hbm [shape: f32[8,128], index: 2, kind: input, shape index: {}]   ;;  %s324_s3 = inlined_call_operand.hbm [shape: f32[1,1], index: 3, kind: output, shape index: {}]  }
   0x1   :  { %9 = vsyncpa [#allocation9], 0 }
   0x2   :  { %10 = vsyncpa [#allocation7], 0  ;;  %s239_s12 = smov [#allocation8]   ;;  %s240_s14 = smov [#allocation5]  }
   0x3   :  { %s27_s13 = sshll.u32 %s239_s12, 4  ;;  %s17_s15 = sshll.u32 %s240_s14, 4  ;;  %s28_s13 = int_to_ptr.vmem [resolvable:$true] %s27_s13  ;;  %s18_s15 = int_to_ptr.vmem [resolvable:$true] %s17_s15 }
   0x4   :  { %s145_s18 = scalar_lea.hbm %s322_s1, 128 }
   0x5   :  { %p146_p0 = scmp.ne.s32.totalorder %s322_s1, %s145_s18  ;;  %p149_p1 = scmp.lt.u32.totalorder %s145_s18, %s322_s1 }
   0x7   :  { %p151_p2 = pnand %p149_p1, %p146_p0 }
   0x9   :  { %154 = shalt.err (!%p151_p2)
}
   0xa   :  { %s155_s23 = scalar_lea.vmem %s28_s13, 128  ;;  %p160_p4 = scmp.lt.s32.totalorder %s28_s13, %s28_s13 }
   0xb   :  { %p156_p3 = scmp.ne.s32.totalorder %s28_s13, %s155_s23  ;;  %p161_p5 = scmp.lt.s32.totalorder %s155_s23, %s155_s23 }
   0xd   :  { %p162_p6 = por %p161_p5, %p160_p4 }
   0xf   :  { %p163_p7 = pnand %p162_p6, %p156_p3 }
  0x11   :  { %166 = shalt.err (!%p163_p7)
}
  0x12   :  { %30 = dma.hbm_to_vmem [thread:$0]  %s322_s1, 128, %s28_s13, [#allocation9]  }
  0x13   :  { %s167_s28 = scalar_lea.hbm %s321_s0, 128 }
  0x14   :  { %p168_p8 = scmp.ne.s32.totalorder %s321_s0, %s167_s28  ;;  %p171_p9 = scmp.lt.u32.totalorder %s167_s28, %s321_s0 }
  0x16   :  { %p173_p10 = pnand %p171_p9, %p168_p8 }
  0x18   :  { %176 = shalt.err (!%p173_p10)
}
  0x19   :  { %s177_s6 = scalar_lea.vmem %s18_s15, 128  ;;  %p182_p12 = scmp.lt.s32.totalorder %s18_s15, %s18_s15 }
  0x1a   :  { %p178_p11 = scmp.ne.s32.totalorder %s18_s15, %s177_s6  ;;  %p183_p13 = scmp.lt.s32.totalorder %s177_s6, %s177_s6 }
  0x1c   :  { %p184_p0 = por %p183_p13, %p182_p12 }
  0x1e   :  { %p185_p1 = pnand %p184_p0, %p178_p11 }
  0x20   :  { %188 = shalt.err (!%p185_p1)
}
  0x21   :  { %20 = dma.hbm_to_vmem [thread:$0]  %s321_s0, 128, %s18_s15, [#allocation6]  }
  0x22   :  { %s241_s8 = smov [#allocation10]   ;;  %s189_s12 = scalar_lea.hbm %s323_s2, 128 }
  0x23   :  { %s37_s9 = sshll.u32 %s241_s8, 4  ;;  %p190_p2 = scmp.ne.s32.totalorder %s323_s2, %s189_s12  ;;  %s38_s9 = int_to_ptr.vmem [resolvable:$true] %s37_s9 }
  0x24   :  { %p193_p3 = scmp.lt.u32.totalorder %s189_s12, %s323_s2 }
  0x26   :  { %p195_p4 = pnand %p193_p3, %p190_p2 }
  0x28   :  { %198 = shalt.err (!%p195_p4)
}
  0x29   :  { %s199_s18 = scalar_lea.vmem %s38_s9, 128  ;;  %p204_p6 = scmp.lt.s32.totalorder %s38_s9, %s38_s9 }
  0x2a   :  { %p200_p5 = scmp.ne.s32.totalorder %s38_s9, %s199_s18  ;;  %p205_p7 = scmp.lt.s32.totalorder %s199_s18, %s199_s18 }
  0x2c   :  { %p206_p8 = por %p205_p7, %p204_p6 }
  0x2e   :  { %p207_p9 = pnand %p206_p8, %p200_p5 }
  0x30   :  { %210 = shalt.err (!%p207_p9)
}
  0x31   :  { %40 = dma.hbm_to_vmem [thread:$0]  %s323_s2, 128, %s38_s9, [#allocation9]  }
  0x32   :  { %233 = dma.done.wait [#allocation6], 128  }
  0x33   :  { %234 = vsyncadd [#allocation6], 4294967168 }
  0x34   :  { %235 = dma.done.wait [#allocation9], 256  }
  0x35   :  { %236 = vsyncadd [#allocation9], 4294967040  ;;  %v60_v0 = vld [vmem:[#allocation10] sm:$0xff]  ;;  %v58_v1 = vld [vmem:[#allocation5] sm:$0xff]  ;;  %vm54_vm0 = vcmask 0   ;;  %v242_v5 = vmov 0.0  }
  0x36   :  { %v59_v2 = vld [vmem:[#allocation8] sm:$0xff]  ;;  %91 = vmin.xlane.f32.xlu1 %v60_v0  ;;  %55 = vst.msk [vmem:[#allocation2] sm:$0x1] %vm54_vm0, %v242_v5  ;;  %v243_v6 = vmov -inf   ;;  %v244_v7 = vmov inf   ;;  %s245_s21 = smov [#allocation11]  }
  0x37   :  { %v61_v3 = vsub.f32 %v58_v1, %v59_v2  ;;  %56 = vst.msk [vmem:[#allocation3] sm:$0x1] %vm54_vm0, %v243_v6  ;;  %57 = vst.msk [vmem:[#allocation4] sm:$0x1] %vm54_vm0, %v244_v7  ;;  %s120_s22 = sshll.u32 %s245_s21, 4  ;;  %s121_s22 = int_to_ptr.vmem [resolvable:$true] %s120_s22 }
  0x38   :  { %s211_s23 = scalar_lea.vmem %s121_s22, 16  ;;  %s215_s24 = scalar_lea.vmem %s121_s22, 32 }
  0x39   :  { %v62_v4 = vand.u32 2147483647, %v61_v3  ;;  %p212_p10 = scmp.ne.s32.totalorder %s121_s22, %s211_s23  ;;  %p216_p11 = scmp.lt.s32.totalorder %s121_s22, %s121_s22 }
  0x3a   :  { %p217_p12 = scmp.lt.s32.totalorder %s215_s24, %s211_s23 }
  0x3b   :  { %64 = vadd.xlane.f32.xlu0 %v62_v4 }
  0x3c   :  { %p218_p13 = por %p217_p12, %p216_p11 }
  0x3d   :  { %v63_v29 = vld [vmem:[#allocation2] sm:$0x1] }
  0x3e   :  { %v77_v32 = vld [vmem:[#allocation3] sm:$0x1]  ;;  %v90_v33 = vld [vmem:[#allocation4] sm:$0x1]  ;;  %p219_p0 = pnand %p218_p13, %p212_p10 }
  0x3f   :  { %78 = vmax.xlane.f32.xlu0 %v60_v0 }
  0xc3   :  { %v92_v8 = vpop.xlane.xlu1 %91 }
  0xc4   :  { %v93_v9 = vrot.slane %v92_v8, 4 }
  0xc6   :  { %v94_v10 = vmin.f32 %v92_v8, %v93_v9 }
  0xc8   :  { %v65_v11 = vpop.xlane.xlu0 %64  ;;  %v95_v14 = vrot.slane %v94_v10, 2 }
  0xc9   :  { %v66_v12 = vrot.slane %v65_v11, 4 }
  0xca   :  { %v96_v20 = vmin.f32 %v94_v10, %v95_v14 }
  0xcb   :  { %v67_v13 = vadd.f32 %v66_v12, %v65_v11 }
  0xcc   :  { %v79_v15 = vpop.xlane.xlu0 %78  ;;  %v97_v25 = vrot.slane %v96_v20, 1 }
  0xcd   :  { %v68_v16 = vrot.slane %v67_v13, 2  ;;  %v80_v17 = vrot.slane %v79_v15, 4 }
  0xce   :  { %v98_v28 = vmin.f32 %v96_v20, %v97_v25 }
  0xcf   :  { %v81_v18 = vmax.f32 %v79_v15, %v80_v17  ;;  %v69_v19 = vadd.f32 %v68_v16, %v67_v13 }
  0xd1   :  { %v82_v21 = vrot.slane %v81_v18, 2  ;;  %v70_v22 = vrot.slane %v69_v19, 1 }
  0xd3   :  { %v83_v23 = vmax.f32 %v81_v18, %v82_v21  ;;  %v71_v24 = vadd.f32 %v70_v22, %v69_v19 }
  0xd5   :  { %130 = vpush %v71_v24  ;;  %v84_v26 = vrot.slane %v83_v23, 1 }
  0xd7   :  { %v85_v27 = vmax.f32 %v83_v23, %v84_v26 }
  0xd9   :  { %132 = vpush %v85_v27 }
  0xda   :  { %134 = vpush %v98_v28 }
 0x106   :  { %s131_s2 = spop %130 }
 0x107   :  { %v73_v30 = vstv %s131_s2 }
 0x108   :  { %v74_v31 = vadd.f32 %v73_v30, %v63_v29 }
 0x10a   :  { %76 = vst.msk [vmem:[#allocation2] sm:$0x1] %vm54_vm0, %v74_v31  ;;  %s133_s19 = spop %132 }
 0x10b   :  { %v87_v34 = vstv %s133_s19  ;;  %s135_s20 = spop %134 }
 0x10c   :  { %v88_v35 = vmax.f32 %v77_v32, %v87_v34  ;;  %v100_v36 = vstv %s135_s20 }
 0x10d   :  { %v101_v37 = vmin.f32 %v90_v33, %v100_v36 }
 0x10e   :  { %89 = vst.msk [vmem:[#allocation3] sm:$0x1] %vm54_vm0, %v88_v35 }
 0x10f   :  { %102 = vst.msk [vmem:[#allocation4] sm:$0x1] %vm54_vm0, %v101_v37 }
 0x111   :  { %v106_v41 = vld [vmem:[#allocation2] sm:$0x1] }
 0x112   :  { %v107_v42 = vmul.f32 0.125, %v106_v41 }
 0x115   :  { %v108_v38 = vld [vmem:[#allocation3] sm:$0x1] }
 0x116   :  { %v109_v39 = vld [vmem:[#allocation4] sm:$0x1] }
 0x117   :  { %v110_v40 = vsub.f32 %v108_v38, %v109_v39 }
 0x119   :  { %143 = vrcp.f32 %v110_v40 }
 0x123   :  { %v144_v43 = vpop.eup %143 }
 0x124   :  { %v112_v44 = vmul.f32 %v144_v43, %v107_v42 }
 0x126   :  { %113 = vst.msk [vmem:[#allocation11] sm:$0x1] %vm54_vm0, %v112_v44 }
 0x127   :  { %222 = shalt.err (!%p219_p0)
}
 0x128   :  { %s223_s27 = scalar_lea.hbm %s324_s3, 16 }
 0x129   :  { %p224_p1 = scmp.ne.s32.totalorder %s324_s3, %s223_s27  ;;  %p227_p2 = scmp.lt.u32.totalorder %s223_s27, %s324_s3 }
 0x12b   :  { %p229_p3 = pnand %p227_p2, %p224_p1 }
 0x12d   :  { %232 = shalt.err (!%p229_p3)
}
 0x12e   :  { %123 = dma.vmem_to_hbm [thread:$0]  %s121_s22, 16, %s324_s3, [#allocation7]  }
 0x12f   :  { %237 = dma.done.wait [#allocation7], 16  }
 0x130   :  { %238 = vsyncadd [#allocation7], 4294967280 }
 0x131   :  { %127 = vsyncpa [#allocation6], 1 }
 0x132   :  { %128 = vsyncpa [#allocation9], 1 }
 0x133   :  { %129 = vsyncpa [#allocation7], 1 }

</bundles_post_ra>
